<compile_context>
chip_gen: v7x
topology: tpu7x:2x2x1
jax: 0.10.0
libtpu: 0.0.40
codegen_flags: <defaults>
</compile_context>

<pallas_src>
import functools

import numpy as np
import jax
import jax.numpy as jnp
from jax.experimental import pallas as pl
from jax.experimental.pallas import tpu as pltpu

_LANES = 128
_MAX_TILE_ROWS = 256          # 256 rows * 128 lanes = 32768 pixels per grid step
_NUM_HW_CHUNKS = 2            # second 'parallel' axis -> megacore work for N == 1


def _scoped_vmem_bytes():
    """Generation-aware scoped-VMEM request (v7x: 64 MiB/TC, v5e/v6e: 128 MiB)."""
    try:
        phys = int(pltpu.get_tpu_info().vmem_capacity_bytes)
    except Exception:  # interpret mode / AOT without a chip
        phys = 64 << 20
    phys = max(phys, 16 << 20)
    return min(phys // 2, 48 << 20)


def _pick_tile_rows(c, logits_elt, label_elt, p_rows, scoped_bytes):
    """Rows (of 128 lanes) per grid step; the VMEM budget is the binding cap."""
    budget = (scoped_bytes * 2) // 3          # headroom for Mosaic internals
    # Per-pixel on-chip footprint:
    #   2x double-buffered logits blocks     : 2 * c * logits_elt
    #   2x double-buffered label blocks      : 2 * label_elt
    #   ~4x (C, tile)-sized f32 temporaries  : 4 * c * 4  (upcast / exp / iota / select)
    #   2x f32 accumulator scratch slabs     : 2 * 4
    per_pixel = 2 * c * logits_elt + 2 * label_elt + 4 * c * 4 + 2 * 4
    rows_cap = budget // (per_pixel * _LANES)
    rows_cap = max(8, (rows_cap // 8) * 8)
    if p_rows <= min(rows_cap, _MAX_TILE_ROWS):
        return p_rows                         # one tile covers the whole image
    return min(rows_cap, _MAX_TILE_ROWS)      # multiple of 8


def _masked_ce_reduce_kernel(logits_ref, labels_ref, psum_ref, pcnt_ref,
                             acc_sum, acc_cnt, *, ignore_index, hw,
                             rows_per_tile, tiles_per_chunk):
    """Masked pixel-wise CE, accumulated per (batch element, HW chunk)."""
    k = pl.program_id(1)   # HW chunk ('parallel')
    j = pl.program_id(2)   # tile within chunk ('arbitrary' / reduction axis)

    @pl.when(j == 0)
    def _():
        acc_sum[...] = jnp.zeros_like(acc_sum)
        acc_cnt[...] = jnp.zeros_like(acc_cnt)

    logits = logits_ref[...].astype(jnp.float32)   # (1, C, S, 128)
    labels = labels_ref[...].astype(jnp.int32)     # (1, 1, S, 128)
    _, c, s, l = logits.shape

    # Global pixel index of every lane; masks both the ragged last tile and the
    # (clamped) duplicated step of the last chunk -- no host-side jnp.pad.
    row_iota = jax.lax.broadcasted_iota(jnp.int32, (1, 1, s, l), 2)
    lane_iota = jax.lax.broadcasted_iota(jnp.int32, (1, 1, s, l), 3)
    base_row = (k * tiles_per_chunk + j) * rows_per_tile
    in_range = (base_row + row_iota) * _LANES + lane_iota < hw

    # Numerically-stable log-softmax CE: lse(logits) - logits[label].  The class
    # axis is a leading dim, so these reductions are plane-wise elementwise ops
    # over full (S, 128) vregs (no sublane underfill for small C).
    m = jnp.max(logits, axis=1, keepdims=True)                                # (1,1,S,128)
    lse = m + jnp.log(jnp.sum(jnp.exp(logits - m), axis=1, keepdims=True))    # (1,1,S,128)
    cls_iota = jax.lax.broadcasted_iota(jnp.int32, (1, c, s, l), 1)
    picked = jnp.sum(jnp.where(cls_iota == labels, logits, 0.0),
                     axis=1, keepdims=True)                                   # (1,1,S,128)

    valid = jnp.logical_and(labels != ignore_index, in_range)                 # (1,1,S,128)
    ce = jnp.where(valid, lse - picked, 0.0)

    # Lane-dense elementwise accumulation; the cross-lane reduce + tiny scalar
    # store happen once per (batch, chunk) under pl.when(last tile).
    acc_sum[...] += ce
    acc_cnt[...] += valid.astype(jnp.float32)

    @pl.when(j == pl.num_programs(2) - 1)
    def _():
        psum_ref[...] = jnp.sum(acc_sum[...]).reshape(1, 1, 1, 1)
        pcnt_ref[...] = jnp.sum(acc_cnt[...]).reshape(1, 1, 1, 1)


def _pixelwise_ce_loss_pallas(logits_nchw, labels_nhw, ignore_index):
    """Returns (loss_sum, valid_count) as f32 scalars, computed in-kernel."""
    n, c, h, w = logits_nchw.shape
    hw = h * w

    # Free reshapes only -- no transpose, no host-side dtype upcast.
    logits_flat = logits_nchw.reshape(n, c, hw)
    labels_flat = labels_nhw.reshape(n, 1, hw)   # caller dtype; widened in-kernel

    if hw % _LANES:
        # TODO(synk): rare for segmentation shapes; a 3-D fallback kernel would
        # avoid this small (<128 px) pad copy entirely.
        pad = _LANES - hw % _LANES
        logits_flat = jnp.pad(logits_flat, ((0, 0), (0, 0), (0, pad)))
        labels_flat = jnp.pad(labels_flat, ((0, 0), (0, 0), (0, pad)))
    p_rows = (hw + _LANES - 1) // _LANES

    # Pixels -> (rows, 128): class reductions then run over full-lane vregs.
    logits_4d = logits_flat.reshape(n, c, p_rows, _LANES)
    labels_4d = labels_flat.reshape(n, 1, p_rows, _LANES)

    scoped = _scoped_vmem_bytes()
    rows = _pick_tile_rows(c, jnp.dtype(logits_4d.dtype).itemsize,
                           jnp.dtype(labels_4d.dtype).itemsize, p_rows, scoped)
    total_tiles = -(-p_rows // rows)
    n_chunks = _NUM_HW_CHUNKS if total_tiles >= 2 else 1
    tiles_per_chunk = -(-total_tiles // n_chunks)

    def in_map(i, k, j):
        # Clamp so the (possibly duplicated) last step of the last chunk stays
        # in bounds; the kernel's in_range mask zeroes its contribution.
        return (i, 0, jnp.minimum(k * tiles_per_chunk + j, total_tiles - 1), 0)

    kernel = functools.partial(_masked_ce_reduce_kernel,
                               ignore_index=ignore_index, hw=hw,
                               rows_per_tile=rows,
                               tiles_per_chunk=tiles_per_chunk)

    psum, pcnt = pl.pallas_call(
        kernel,
        out_shape=(jax.ShapeDtypeStruct((n, n_chunks, 1, 1), jnp.float32),
                   jax.ShapeDtypeStruct((n, n_chunks, 1, 1), jnp.float32)),
        grid_spec=pltpu.PrefetchScalarGridSpec(
            num_scalar_prefetch=0,
            grid=(n, n_chunks, tiles_per_chunk),
            in_specs=[
                pl.BlockSpec((1, c, rows, _LANES), in_map),
                pl.BlockSpec((1, 1, rows, _LANES), in_map),
            ],
            out_specs=[
                pl.BlockSpec((1, 1, 1, 1), lambda i, k, j: (i, k, 0, 0)),
                pl.BlockSpec((1, 1, 1, 1), lambda i, k, j: (i, k, 0, 0)),
            ],
            scratch_shapes=[
                pltpu.VMEM((1, 1, rows, _LANES), jnp.float32),
                pltpu.VMEM((1, 1, rows, _LANES), jnp.float32),
            ],
        ),
        compiler_params=pltpu.CompilerParams(
            dimension_semantics=("parallel", "parallel", "arbitrary"),
            vmem_limit_bytes=int(scoped)),
    )(logits_4d, labels_4d)

    # Tiny (n * n_chunks)-element combine outside the kernel; lets both the
    # batch axis and the HW-chunk axis shard across v7x's two TensorCores.
    return jnp.sum(psum), jnp.sum(pcnt)


class BaseWeightedLossPallas:
    """JAX/Pallas port of BaseWeightedLoss with a masked-CE `_forward`."""

    def __init__(self, reduction="mean", loss_weight=1.0, ignore_index=255,
                 sampler=None, loss_jitter_prob=None, loss_jitter_momentum=0.1):
        assert reduction in ("mean", "sum")
        self.reduction = reduction
        self.ignore_index = ignore_index
        self.sampler = None  # TODO(synk): mmseg build_pixel_sampler (config-driven) not ported
        self._smooth_loss = None
        self._loss_jitter_momentum = loss_jitter_momentum
        assert 0.0 < self._loss_jitter_momentum < 1.0
        self._jitter_sigma_factor = None
        self._jitter_rng = None
        if loss_jitter_prob is not None:
            assert 0.0 < loss_jitter_prob < 1.0
            erfinv = float(jax.scipy.special.erfinv(
                jnp.float32(1.0 - 2.0 * loss_jitter_prob)))
            self._jitter_sigma_factor = 1.0 / (2.0 ** 0.5 * erfinv)
            self._jitter_rng = np.random.default_rng(0)  # host-side, like torch.normal
        # constant scalar scheduler (default build_scalar_scheduler behaviour)
        # TODO(synk): non-constant loss-weight schedulers not ported.
        self._loss_weight = float(loss_weight)
        self._iter = 0
        self._last_loss_weight = 0.0
        self._epoch_size = 1

    def set_step_params(self, init_iter, epoch_size):
        assert init_iter >= 0 and epoch_size > 0
        self._iter = init_iter
        self._epoch_size = epoch_size

    @property
    def with_loss_jitter(self):
        return self._jitter_sigma_factor is not None

    @property
    def iter(self):
        return self._iter

    @property
    def epoch_size(self):
        return self._epoch_size

    @property
    def last_loss_weight(self):
        return self._last_loss_weight

    def _forward(self, logits, labels):
        loss_sum, valid_cnt = _pixelwise_ce_loss_pallas(
            logits, labels, self.ignore_index)
        if self.reduction == "mean":
            loss = loss_sum / jnp.maximum(valid_cnt, 1.0)
        else:  # 'sum'
            loss = loss_sum
        return loss, {}

    def forward(self, logits, labels):
        loss, meta = self._forward(logits, labels)
        meta = {k: jnp.asarray(v, dtype=loss.dtype) for k, v in meta.items()}
        if self.with_loss_jitter and loss.size == 1:
            loss_val = float(loss)  # host sync, mirrors loss.item() in torch
            if self._smooth_loss is None:
                self._smooth_loss = loss_val
            else:
                self._smooth_loss = ((1.0 - self._loss_jitter_momentum) * self._smooth_loss
                                     + self._loss_jitter_momentum * loss_val)
            jitter_sigma = self._jitter_sigma_factor * abs(self._smooth_loss)
            jitter_point = jnp.asarray(self._jitter_rng.normal(0.0, jitter_sigma),
                                       dtype=loss.dtype)
            loss = jnp.abs(loss - jitter_point) + jitter_point
        self._last_loss_weight = self._loss_weight  # constant scheduler(iter, epoch_size)
        out_loss = self._last_loss_weight * loss
        self._iter += 1
        return out_loss, meta

    __call__ = forward


def _reference_loss(logits, labels, ignore_index, loss_weight, reduction):
    """Pure-JAX reference for verification."""
    n, c, h, w = logits.shape
    lg = jnp.transpose(logits, (0, 2, 3, 1)).reshape(-1, c).astype(jnp.float32)
    lb = labels.reshape(-1)
    logp = jax.nn.log_softmax(lg, axis=-1)
    valid = lb != ignore_index
    lb_safe = jnp.where(valid, lb, 0)
    ce = -jnp.take_along_axis(logp, lb_safe[:, None], axis=-1)[:, 0]
    ce = jnp.where(valid, ce, 0.0)
    if reduction == "mean":
        loss = jnp.sum(ce) / jnp.maximum(jnp.sum(valid.astype(jnp.float32)), 1.0)
    else:
        loss = jnp.sum(ce)
    return loss_weight * loss


if __name__ == "__main__":
    key = jax.random.PRNGKey(0)
    k1, k2, k3 = jax.random.split(key, 3)

    # Test 1: small NCHW shapes, f32 logits, mean reduction.
    N, C, H, W = 2, 4, 16, 16
    logits = jax.random.normal(k1, (N, C, H, W), dtype=jnp.float32)
    labels = jax.random.randint(k2, (N, H, W), 0, C, dtype=jnp.int32)
    ignore_mask = jax.random.uniform(k3, (N, H, W)) < 0.1
    labels = jnp.where(ignore_mask, 255, labels)

    loss_mod = BaseWeightedLossPallas(reduction="mean", loss_weight=1.0,
                                      ignore_index=255)
    loss_mod.set_step_params(init_iter=0, epoch_size=100)
    out_loss, _ = loss_mod(logits, labels)
    out_loss = jax.block_until_ready(out_loss)
    ref = _reference_loss(logits, labels, 255, 1.0, "mean")
    assert jnp.allclose(out_loss, ref, rtol=1e-5, atol=1e-5), (out_loss, ref)

    # Test 2: bf16 logits (halves HBM traffic; kernel upcasts internally).
    logits_bf16 = logits.astype(jnp.bfloat16)
    loss_bf16, _ = loss_mod(logits_bf16, labels)
    loss_bf16 = jax.block_until_ready(loss_bf16)
    ref_bf16 = _reference_loss(logits_bf16.astype(jnp.float32), labels, 255, 1.0, "mean")
    assert jnp.allclose(loss_bf16, ref_bf16, rtol=1e-4, atol=1e-4), (loss_bf16, ref_bf16)

    # Test 3: N=1 with several HW tiles -> exercises the parallel HW-chunk axis,
    # the ragged last tile and the clamped/masked duplicated step.
    N2, C2, H2, W2 = 1, 5, 240, 320
    kk1, kk2, kk3 = jax.random.split(jax.random.PRNGKey(1), 3)
    logits2 = jax.random.normal(kk1, (N2, C2, H2, W2), dtype=jnp.float32)
    labels2 = jax.random.randint(kk2, (N2, H2, W2), 0, C2, dtype=jnp.int32)
    labels2 = jnp.where(jax.random.uniform(kk3, (N2, H2, W2)) < 0.05, 255, labels2)
    loss_mod2 = BaseWeightedLossPallas(reduction="sum", loss_weight=0.5,
                                       ignore_index=255)
    out2, _ = loss_mod2(logits2, labels2)
    out2 = jax.block_until_ready(out2)
    ref2 = _reference_loss(logits2, labels2, 255, 0.5, "sum")
    assert jnp.allclose(out2, ref2, rtol=2e-4, atol=1e-3), (out2, ref2)

    print("KERNEL_OK")
</pallas_src>

<mosaic_0001>
module attributes {stable_mosaic.version = 11 : i64} {
  func.func @_masked_ce_reduce_kernel(%arg0: i32, %arg1: i32, %arg2: i32, %arg3: memref<1x4x2x128xf32, #tpu.memory_space<vmem>>, %arg4: memref<1x1x2x128xi32, #tpu.memory_space<vmem>>, %arg5: memref<1x1x1x1xf32, #tpu.memory_space<vmem>>, %arg6: memref<1x1x1x1xf32, #tpu.memory_space<vmem>>, %arg7: memref<1x1x2x128xf32, #tpu.memory_space<vmem>>, %arg8: memref<1x1x2x128xf32, #tpu.memory_space<vmem>>) attributes {dimension_semantics = [#tpu.dimension_semantics<parallel>, #tpu.dimension_semantics<parallel>, #tpu.dimension_semantics<arbitrary>], iteration_bounds = array<i64: 2, 1, 1>, scalar_prefetch = 0 : i64, scratch_operands = 2 : i64, tpu.core_type = #tpu.core_type<tc>, window_params = [{transform_indices = @transform_0, window_bounds = array<i64: 1, 4, 2, 128>}, {transform_indices = @transform_1, window_bounds = array<i64: 1, 1, 2, 128>}, {transform_indices = @transform_2, window_bounds = array<i64: 1, 1, 1, 1>}, {transform_indices = @transform_3, window_bounds = array<i64: 1, 1, 1, 1>}]} {
    %c0_i32 = arith.constant 0 : i32
    %0 = arith.cmpi eq, %arg2, %c0_i32 : i32
    %1 = arith.extui %0 : i1 to i32
    %c0_i32_0 = arith.constant 0 : i32
    %2 = arith.cmpi ne, %1, %c0_i32_0 : i32
    scf.if %2 {
      %cst_30 = arith.constant 0.000000e+00 : f32
      %50 = vector.broadcast %cst_30 : f32 to vector<1x1x2x128xf32>
      %c0_31 = arith.constant 0 : index
      %c0_32 = arith.constant 0 : index
      %c0_33 = arith.constant 0 : index
      %c0_34 = arith.constant 0 : index
      %51 = vector.load %arg7[%c0_31, %c0_32, %c0_33, %c0_34] : memref<1x1x2x128xf32, #tpu.memory_space<vmem>>, vector<1x1x2x128xf32>
      tpu.vector_store %arg7[%c0_31, %c0_32, %c0_33, %c0_34], %50 {strides = array<i32>} : memref<1x1x2x128xf32, #tpu.memory_space<vmem>>, vector<1x1x2x128xf32>,
      %cst_35 = arith.constant 0.000000e+00 : f32
      %52 = vector.broadcast %cst_35 : f32 to vector<1x1x2x128xf32>
      %c0_36 = arith.constant 0 : index
      %c0_37 = arith.constant 0 : index
      %c0_38 = arith.constant 0 : index
      %c0_39 = arith.constant 0 : index
      %53 = vector.load %arg8[%c0_36, %c0_37, %c0_38, %c0_39] : memref<1x1x2x128xf32, #tpu.memory_space<vmem>>, vector<1x1x2x128xf32>
      tpu.vector_store %arg8[%c0_36, %c0_37, %c0_38, %c0_39], %52 {strides = array<i32>} : memref<1x1x2x128xf32, #tpu.memory_space<vmem>>, vector<1x1x2x128xf32>,
    } else {
    }
    %c0 = arith.constant 0 : index
    %c0_1 = arith.constant 0 : index
    %c0_2 = arith.constant 0 : index
    %c0_3 = arith.constant 0 : index
    %3 = vector.load %arg3[%c0, %c0_1, %c0_2, %c0_3] : memref<1x4x2x128xf32, #tpu.memory_space<vmem>>, vector<1x4x2x128xf32>
    %c0_4 = arith.constant 0 : index
    %c0_5 = arith.constant 0 : index
    %c0_6 = arith.constant 0 : index
    %c0_7 = arith.constant 0 : index
    %4 = vector.load %arg4[%c0_4, %c0_5, %c0_6, %c0_7] : memref<1x1x2x128xi32, #tpu.memory_space<vmem>>, vector<1x1x2x128xi32>
    %5 = tpu.iota {dimensions = array<i32: 2>} : vector<1x1x2x128xi32>
    %6 = tpu.iota {dimensions = array<i32: 3>} : vector<1x1x2x128xi32>
    %c1_i32 = arith.constant 1 : i32
    %7 = arith.muli %arg1, %c1_i32 : i32
    %8 = arith.addi %7, %arg2 : i32
    %c2_i32 = arith.constant 2 : i32
    %9 = arith.muli %8, %c2_i32 : i32
    %10 = vector.broadcast %9 : i32 to vector<1x1x2x128xi32>
    %11 = arith.addi %10, %5 : vector<1x1x2x128xi32>
    %c128_i32 = arith.constant 128 : i32
    %12 = vector.broadcast %c128_i32 : i32 to vector<1x1x2x128xi32>
    %13 = arith.muli %11, %12 : vector<1x1x2x128xi32>
    %14 = arith.addi %13, %6 : vector<1x1x2x128xi32>
    %c256_i32 = arith.constant 256 : i32
    %15 = vector.broadcast %c256_i32 : i32 to vector<1x1x2x128xi32>
    %16 = arith.cmpi slt, %14, %15 : vector<1x1x2x128xi32>
    %cst = arith.constant dense<0xFF800000> : vector<1x2x128xf32>
    %17 = vector.multi_reduction <maximumf>, %3, %cst [1] : vector<1x4x2x128xf32> to vector<1x2x128xf32>
    %18 = vector.shape_cast %17 : vector<1x2x128xf32> to vector<1x1x2x128xf32>
    %19 = vector.broadcast %18 : vector<1x1x2x128xf32> to vector<1x4x2x128xf32>
    %20 = arith.subf %3, %19 : vector<1x4x2x128xf32>
    %21 = math.exp %20 : vector<1x4x2x128xf32>
    %cst_8 = arith.constant dense<0.000000e+00> : vector<1x2x128xf32>
    %22 = vector.multi_reduction <add>, %21, %cst_8 [1] : vector<1x4x2x128xf32> to vector<1x2x128xf32>
    %23 = vector.shape_cast %22 : vector<1x2x128xf32> to vector<1x1x2x128xf32>
    %24 = math.log %23 : vector<1x1x2x128xf32>
    %25 = arith.addf %18, %24 : vector<1x1x2x128xf32>
    %26 = tpu.iota {dimensions = array<i32: 1>} : vector<1x4x2x128xi32>
    %27 = vector.broadcast %4 : vector<1x1x2x128xi32> to vector<1x4x2x128xi32>
    %28 = arith.cmpi eq, %26, %27 : vector<1x4x2x128xi32>
    %cst_9 = arith.constant 0.000000e+00 : f32
    %29 = vector.broadcast %cst_9 : f32 to vector<1x4x2x128xf32>
    %30 = arith.select %28, %3, %29 : vector<1x4x2x128xi1>, vector<1x4x2x128xf32>
    %cst_10 = arith.constant dense<0.000000e+00> : vector<1x2x128xf32>
    %31 = vector.multi_reduction <add>, %30, %cst_10 [1] : vector<1x4x2x128xf32> to vector<1x2x128xf32>
    %32 = vector.shape_cast %31 : vector<1x2x128xf32> to vector<1x1x2x128xf32>
    %c255_i32 = arith.constant 255 : i32
    %33 = vector.broadcast %c255_i32 : i32 to vector<1x1x2x128xi32>
    %34 = arith.cmpi ne, %4, %33 : vector<1x1x2x128xi32>
    %35 = arith.andi %34, %16 : vector<1x1x2x128xi1>
    %36 = arith.subf %25, %32 : vector<1x1x2x128xf32>
    %cst_11 = arith.constant 0.000000e+00 : f32
    %37 = vector.broadcast %cst_11 : f32 to vector<1x1x2x128xf32>
    %38 = arith.select %35, %36, %37 : vector<1x1x2x128xi1>, vector<1x1x2x128xf32>
    %c0_12 = arith.constant 0 : index
    %c0_13 = arith.constant 0 : index
    %c0_14 = arith.constant 0 : index
    %c0_15 = arith.constant 0 : index
    %39 = vector.load %arg7[%c0_12, %c0_13, %c0_14, %c0_15] : memref<1x1x2x128xf32, #tpu.memory_space<vmem>>, vector<1x1x2x128xf32>
    %40 = arith.addf %39, %38 : vector<1x1x2x128xf32>
    %c0_16 = arith.constant 0 : index
    %c0_17 = arith.constant 0 : index
    %c0_18 = arith.constant 0 : index
    %c0_19 = arith.constant 0 : index
    %41 = vector.load %arg7[%c0_16, %c0_17, %c0_18, %c0_19] : memref<1x1x2x128xf32, #tpu.memory_space<vmem>>, vector<1x1x2x128xf32>
    tpu.vector_store %arg7[%c0_16, %c0_17, %c0_18, %c0_19], %40 {strides = array<i32>} : memref<1x1x2x128xf32, #tpu.memory_space<vmem>>, vector<1x1x2x128xf32>,
    %c0_20 = arith.constant 0 : index
    %c0_21 = arith.constant 0 : index
    %c0_22 = arith.constant 0 : index
    %c0_23 = arith.constant 0 : index
    %42 = vector.load %arg8[%c0_20, %c0_21, %c0_22, %c0_23] : memref<1x1x2x128xf32, #tpu.memory_space<vmem>>, vector<1x1x2x128xf32>
    %43 = arith.extui %35 : vector<1x1x2x128xi1> to vector<1x1x2x128xi32>
    %44 = arith.sitofp %43 : vector<1x1x2x128xi32> to vector<1x1x2x128xf32>
    %45 = arith.addf %42, %44 : vector<1x1x2x128xf32>
    %c0_24 = arith.constant 0 : index
    %c0_25 = arith.constant 0 : index
    %c0_26 = arith.constant 0 : index
    %c0_27 = arith.constant 0 : index
    %46 = vector.load %arg8[%c0_24, %c0_25, %c0_26, %c0_27] : memref<1x1x2x128xf32, #tpu.memory_space<vmem>>, vector<1x1x2x128xf32>
    tpu.vector_store %arg8[%c0_24, %c0_25, %c0_26, %c0_27], %45 {strides = array<i32>} : memref<1x1x2x128xf32, #tpu.memory_space<vmem>>, vector<1x1x2x128xf32>,
    %c0_i32_28 = arith.constant 0 : i32
    %47 = arith.cmpi eq, %arg2, %c0_i32_28 : i32
    %48 = arith.extui %47 : i1 to i32
    %c0_i32_29 = arith.constant 0 : i32
    %49 = arith.cmpi ne, %48, %c0_i32_29 : i32
    scf.if %49 {
      %c0_30 = arith.constant 0 : index
      %c0_31 = arith.constant 0 : index
      %c0_32 = arith.constant 0 : index
      %c0_33 = arith.constant 0 : index
      %50 = vector.load %arg7[%c0_30, %c0_31, %c0_32, %c0_33] : memref<1x1x2x128xf32, #tpu.memory_space<vmem>>, vector<1x1x2x128xf32>
      %51 = vector.shape_cast %50 : vector<1x1x2x128xf32> to vector<1x1x1x2x128xf32>
      %cst_34 = arith.constant dense<0.000000e+00> : vector<1xf32>
      %52 = vector.multi_reduction <add>, %51, %cst_34 [1, 2, 3, 4] : vector<1x1x1x2x128xf32> to vector<1xf32>
      %53 = vector.shape_cast %52 : vector<1xf32> to vector<1x1x1x1x1xf32>
      %54 = vector.extract %53[0, 0, 0, 0, 0] : f32 from vector<1x1x1x1x1xf32>
      %55 = vector.broadcast %54 : f32 to vector<1x1x1x1xf32>
      %c0_35 = arith.constant 0 : index
      %c0_36 = arith.constant 0 : index
      %c0_37 = arith.constant 0 : index
      %c0_38 = arith.constant 0 : index
      %56 = vector.load %arg5[%c0_35, %c0_36, %c0_37, %c0_38] : memref<1x1x1x1xf32, #tpu.memory_space<vmem>>, vector<1x1x1x1xf32>
      tpu.vector_store %arg5[%c0_35, %c0_36, %c0_37, %c0_38], %55 {strides = array<i32>} : memref<1x1x1x1xf32, #tpu.memory_space<vmem>>, vector<1x1x1x1xf32>,
      %c0_39 = arith.constant 0 : index
      %c0_40 = arith.constant 0 : index
      %c0_41 = arith.constant 0 : index
      %c0_42 = arith.constant 0 : index
      %57 = vector.load %arg8[%c0_39, %c0_40, %c0_41, %c0_42] : memref<1x1x2x128xf32, #tpu.memory_space<vmem>>, vector<1x1x2x128xf32>
      %58 = vector.shape_cast %57 : vector<1x1x2x128xf32> to vector<1x1x1x2x128xf32>
      %cst_43 = arith.constant dense<0.000000e+00> : vector<1xf32>
      %59 = vector.multi_reduction <add>, %58, %cst_43 [1, 2, 3, 4] : vector<1x1x1x2x128xf32> to vector<1xf32>
      %60 = vector.shape_cast %59 : vector<1xf32> to vector<1x1x1x1x1xf32>
      %61 = vector.extract %60[0, 0, 0, 0, 0] : f32 from vector<1x1x1x1x1xf32>
      %62 = vector.broadcast %61 : f32 to vector<1x1x1x1xf32>
      %c0_44 = arith.constant 0 : index
      %c0_45 = arith.constant 0 : index
      %c0_46 = arith.constant 0 : index
      %c0_47 = arith.constant 0 : index
      %63 = vector.load %arg6[%c0_44, %c0_45, %c0_46, %c0_47] : memref<1x1x1x1xf32, #tpu.memory_space<vmem>>, vector<1x1x1x1xf32>
      tpu.vector_store %arg6[%c0_44, %c0_45, %c0_46, %c0_47], %62 {strides = array<i32>} : memref<1x1x1x1xf32, #tpu.memory_space<vmem>>, vector<1x1x1x1xf32>,
    } else {
    }
    return
  }
  func.func @transform_0(%arg0: i32, %arg1: i32, %arg2: i32) -> (i32, i32, i32, i32) {
    %c1_i32 = arith.constant 1 : i32
    %0 = arith.muli %arg1, %c1_i32 : i32
    %1 = arith.addi %0, %arg2 : i32
    %c0_i32 = arith.constant 0 : i32
    %2 = arith.minsi %1, %c0_i32 : i32
    %c0_i32_0 = arith.constant 0 : i32
    %c0_i32_1 = arith.constant 0 : i32
    %c0_i32_2 = arith.constant 0 : i32
    return %arg0, %c0_i32_0, %2, %c0_i32_1 : i32, i32, i32, i32
  }
  func.func @transform_1(%arg0: i32, %arg1: i32, %arg2: i32) -> (i32, i32, i32, i32) {
    %c1_i32 = arith.constant 1 : i32
    %0 = arith.muli %arg1, %c1_i32 : i32
    %1 = arith.addi %0, %arg2 : i32
    %c0_i32 = arith.constant 0 : i32
    %2 = arith.minsi %1, %c0_i32 : i32
    %c0_i32_0 = arith.constant 0 : i32
    %c0_i32_1 = arith.constant 0 : i32
    %c0_i32_2 = arith.constant 0 : i32
    return %arg0, %c0_i32_0, %2, %c0_i32_1 : i32, i32, i32, i32
  }
  func.func @transform_2(%arg0: i32, %arg1: i32, %arg2: i32) -> (i32, i32, i32, i32) {
    %c0_i32 = arith.constant 0 : i32
    %c0_i32_0 = arith.constant 0 : i32
    %c0_i32_1 = arith.constant 0 : i32
    return %arg0, %arg1, %c0_i32, %c0_i32_0 : i32, i32, i32, i32
  }
  func.func @transform_3(%arg0: i32, %arg1: i32, %arg2: i32) -> (i32, i32, i32, i32) {
    %c0_i32 = arith.constant 0 : i32
    %c0_i32_0 = arith.constant 0 : i32
    %c0_i32_1 = arith.constant 0 : i32
    return %arg0, %arg1, %c0_i32, %c0_i32_0 : i32, i32, i32, i32
  }
}

</mosaic_0001>

<bundles_post_ra>
// kernel: tpu_custom_call.1
= control target key start
LH: loop header
LB: loop body
LE: loop exit
PB: predicated region body
PF: predicated region fallthrough
CT: control target
= control target key end

     0   :  { %9 = vsyncpa [#allocation5], 0  ;;  %s971_s0 = inlined_call_operand.hbm [shape: f32[2,4,2,128], index: 0, kind: input, shape index: {}]   ;;  %s972_s1 = inlined_call_operand.hbm [shape: s32[2,1,2,128], index: 1, kind: input, shape index: {}]   ;;  %s973_s2 = inlined_call_operand.vmem [shape: f32[2,1,1,1], index: 2, kind: output, shape index: {0}]   ;;  %s974_s3 = inlined_call_operand.vmem [shape: f32[2,1,1,1], index: 3, kind: output, shape index: {1}]  }
   0x1   :  { %11 = vsyncpa [#allocation5 + $0x1], 0 }
   0x2   :  { %12 = vsyncpa [#allocation7], 0 }
   0x3   :  { %14 = vsyncpa [#allocation7 + $0x1], 0  ;;  %s782_s12 = smov 0   ;;  %s784_s13 = smov 0  }
   0x4   :  { %s786_s14 = smov 0   ;;  %s788_s15 = smov 0  }
   0x5   :  { %s790_s16 = smov 0   ;;  %s792_s17 = smov 0  }
   0x6 LB: > { %s548_s18 = sadd.s32 4294967295, %s755_s17   ;;  %s39_s19 = sadd.s32 1, %s751_s16  ;;  %s755_s17 = sphi %s792_s17, %s20_s17   ;;  %s751_s16 = sphi %s790_s16, %s988_s16   ;;  %s747_s15 = sphi %s788_s15, %s987_s15   ;;  %s743_s14 = sphi %s786_s14, %s986_s14   ;;  %s739_s13 = sphi %s784_s13, %s985_s13   ;;  %s735_s12 = sphi %s782_s12, %s984_s12  }
   0x7   : > { %p41_p0 = scmp.ge.s32.totalorder %s39_s19, 2  ;;  %s54_s20 = sadd.s32 1, %s743_s14 }
   0x8   : > { %p61_p1 = scmp.ne.s32.totalorder %s743_s14, %s739_s13  ;;  %p62_p2 = scmp.eq.s32.totalorder %s755_s17, 0 }
   0x9   : > { %s990_s19 = smov (%p41_p0, %s39_s19), 0  ;;  %p67_p4 = scmp.ne.s32.totalorder %s739_s13, %s735_s12 }
   0xa   : > { %p818_p3 = por %p62_p2, %p61_p1  ;;  %s49_s22 = ssub.s32 %s751_s16, %s990_s19 }
   0xb   : > { %p68_p5 = scmp.eq.s32.totalorder %s548_s18, 0  ;;  %p52_p6 = scmp.eq.s32.totalorder %s49_s22, 0 }
   0xc   : > { %p579_p8 = scmp.lt.s32.totalorder %s755_s17, 2  ;;  %s834_s25 = sand.u32 1, %s743_s14  }
   0xd   : > { %p825_p7 = por %p68_p5, %p67_p4  ;;  %s563_s26 = sshll.u32 %s751_s16, 7 }
   0xe   : > { %s831_s24 = scalar_select %p52_p6, %s743_s14, %s54_s20  }
   0xf   : > { %s977_s23 = scalar_select %p825_p7, 1, 0 }
  0x10   : > { %s552_s27 = sshll.u32 %s834_s25, 3  ;;  %s841_s30 = scalar_lea.hbm %s971_s0, %s563_s26 }
  0x11   : > { %s185_s4 = scalar_lea.vmem [#allocation4], %s552_s27  ;;  %p845_p9 = pnand %p579_p8, %p818_p3 }
  0x12   : > { %s196_s5 = sshll.u32 %s185_s4, 4  ;;  %s182_s7 = scalar_lea.sflag [#allocation5], %s834_s25  ;;  %s849_s5 = int_to_ptr.vmem [resolvable:$true] %s196_s5 }
  0x13   : > { %s641_s8 = scalar_lea.hbm %s841_s30, 128  ;;  %p643_p11 = pneg %p845_p9 }
  0x14   : > { %p642_p10 = scmp.ne.s32.totalorder %s841_s30, %s641_s8  ;;  %s646_s11 = scalar_lea.hbm %s971_s0, 256 }
  0x15   : > { %p647_p0 = scmp.lt.u32.totalorder %s841_s30, %s971_s0  ;;  %p648_p1 = scmp.lt.u32.totalorder %s646_s11, %s641_s8 }
  0x16   : > { %p644_p12 = pnand %p643_p11, %p642_p10  ;;  %p650_p3 = scmp.lt.u32.totalorder %s641_s8, %s841_s30 }
  0x17   : > { %p649_p2 = por %p648_p1, %p647_p0 }
  0x18   : > { %p645_p13 = pneg %p644_p12 }
  0x19   : > { %p651_p4 = por %p650_p3, %p649_p2 }
  0x1b   : > { %p652_p5 = pnand %p651_p4, %p645_p13 }
  0x1d   : > { %655 = shalt.err (!%p652_p5)
}
  0x1e   : > { %s656_s20 = scalar_lea.vmem %s849_s5, 128  ;;  %s757_s21 = smov [#allocation4]  }
  0x1f   : > { %p657_p6 = scmp.ne.s32.totalorder %s849_s5, %s656_s20  ;;  %s661_s22 = sshll.u32 %s757_s21, 4  ;;  %s662_s22 = int_to_ptr.vmem [resolvable:$false] %s661_s22 }
  0x20   : > { %s663_s26 = scalar_lea.vmem %s662_s22, 256  ;;  %p664_p12 = scmp.lt.s32.totalorder %s849_s5, %s662_s22 }
  0x21   : > { %p659_p8 = pnand %p657_p6, %p643_p11  ;;  %p665_p0 = scmp.lt.s32.totalorder %s663_s26, %s656_s20 }
  0x23   : > { %p660_p10 = pneg %p659_p8  ;;  %p666_p1 = por %p665_p0, %p664_p12 }
  0x25   : > { %p667_p2 = pnand %p666_p1, %p660_p10 }
  0x27   : > { %670 = shalt.err (!%p667_p2)
}
  0x28   : > { %s758_s27 = smov 32   ;;  %s759_s28 = smov 2  }
  0x29   : > { %575 = dma.hbm_to_vmem [thread:$0]  (!%p845_p9), %s841_s30, 128, %s849_s5, %s182_s7, %s758_s27, %s758_s27, %s759_s28  }
  0x2a   : > { %p557_p13 = scmp.ge.s32.totalorder %s755_s17, 1  ;;  %p226_p3 = scmp.lt.s32.totalorder %s755_s17, 3 }
  0x2b   : > { %s555_s29 = sshll.u32 %s834_s25, 1  ;;  %s556_s8 = sshll.u32 %s751_s16, 5 }
  0x2c   : > { %p882_p4 = pnand %p557_p13, %p226_p3  ;;  %s210_s9 = scalar_lea.vmem [#allocation6], %s555_s29 }
  0x2d   : > { %s221_s10 = sshll.u32 %s210_s9, 4  ;;  %s890_s18 = scalar_lea.hbm %s972_s1, %s556_s8  ;;  %s222_s10 = int_to_ptr.vmem [resolvable:$true] %s221_s10 }
  0x2e   : > { %s979_s4 = scalar_select %p882_p4, 1, 0 }
  0x2f   : > { %s207_s30 = scalar_lea.sflag [#allocation7], %s834_s25  ;;  %s671_s5 = scalar_lea.hbm %s890_s18, 32 }
  0x30   : > { %p672_p5 = scmp.ne.s32.totalorder %s890_s18, %s671_s5  ;;  %s676_s21 = scalar_lea.hbm %s972_s1, 64 }
  0x31   : > { %p677_p10 = scmp.lt.u32.totalorder %s890_s18, %s972_s1  ;;  %p678_p12 = scmp.lt.u32.totalorder %s676_s21, %s671_s5 }
  0x32   : > { %p674_p6 = pnand %p672_p5, %p643_p11  ;;  %p680_p1 = scmp.lt.u32.totalorder %s671_s5, %s890_s18 }
  0x33   : > { %p679_p0 = por %p678_p12, %p677_p10 }
  0x34   : > { %p675_p8 = pneg %p674_p6 }
  0x35   : > { %p681_p2 = por %p680_p1, %p679_p0 }
  0x37   : > { %p682_p13 = pnand %p681_p2, %p675_p8 }
  0x39   : > { %685 = shalt.err (!%p682_p13)
}
  0x3a   : > { %s686_s25 = scalar_lea.vmem %s222_s10, 32  ;;  %s760_s27 = smov [#allocation6]  }
  0x3b   : > { %p687_p3 = scmp.ne.s32.totalorder %s222_s10, %s686_s25  ;;  %s691_s28 = sshll.u32 %s760_s27, 4  ;;  %s692_s28 = int_to_ptr.vmem [resolvable:$false] %s691_s28 }
  0x3c   : > { %s693_s29 = scalar_lea.vmem %s692_s28, 64  ;;  %p694_p7 = scmp.lt.s32.totalorder %s222_s10, %s692_s28 }
  0x3d   : > { %p689_p5 = pnand %p687_p3, %p643_p11  ;;  %p695_p4 = scmp.lt.s32.totalorder %s693_s29, %s686_s25 }
  0x3f   : > { %p690_p6 = pneg %p689_p5  ;;  %p696_p10 = por %p695_p4, %p694_p7 }
  0x41   : > { %p697_p12 = pnand %p696_p10, %p690_p6 }
  0x43   : > { %700 = shalt.err (!%p697_p12)
}
  0x44   : > { %578 = dma.hbm_to_vmem [thread:$0]  (!%p845_p9), %s890_s18, 32, %s222_s10, %s207_s30  }
  0x45   : > { %p980_p8 = scmp.ne.s32.totalorder %s979_s4, 0 }
  0x46   : > { %s232_s8 = sand.u32 (!%p980_p8), 1, %s739_s13   ;;  %p981_p11 = scmp.ne.s32.totalorder (!%p980_p8), %s977_s23, 0 }
  0x47   : > { %230 = sbr.rel (%p980_p8) target bundleno = 352 (0x160), region = 28  ;;  %s558_s9 = sshll.u32 (!%p980_p8), %s232_s8, 3 }
  0x48   : > { %s233_s11 = scalar_lea.sflag (!%p980_p8), [#allocation5], %s232_s8  ;;  %s236_s12 = scalar_lea.vmem (!%p980_p8), [#allocation4], %s558_s9 }
  0x4e   : > { %726 = dma.done.wait (%p981_p11), %s233_s11, 128  }
  0x4f   : > { %728 = vsyncadd (%p981_p11), %s233_s11, 4294967168  ;;  %s559_s5 = sshll.u32 %s232_s8, 1  ;;  %s242_s7 = scalar_lea.sflag [#allocation7], %s232_s8 }
  0x50   : > { %s245_s6 = scalar_lea.vmem [#allocation6], %s559_s5 }
  0x51   : > { %730 = dma.done.wait (%p981_p11), %s242_s7, 32  }
  0x52   : > { %732 = vsyncadd (%p981_p11), %s242_s7, 4294967264  ;;  %v309_v0 = vlaneseq  ;;  %v761_v1 = vmov 0.0   ;;  %vm320_vm0 = vcmask 1041408   ;;  %v304_v5 = vld [vmem:[%s236_s12] sm:$0x3]  ;;  %p286_p7 = scmp.lt.s32.totalorder %s747_s15, 1 }
  0x53   : > { %302 = vst [vmem:[#allocation2] sm:$0x3] %v761_v1  ;;  %303 = vst [vmem:[#allocation3] sm:$0x3] %v761_v1  ;;  %v305_v6 = vld [vmem:[%s236_s12 + $0x2] sm:$0x3] }
  0x54   : > { %v310_v2 = vshrl.u32 %v309_v0, 7  ;;  %v312_v3 = vand.u32 127, %v309_v0  ;;  %v306_v7 = vld [vmem:[%s236_s12 + $0x4] sm:$0x3]  ;;  %v307_v9 = vld [vmem:[%s236_s12 + $0x6] sm:$0x3] }
  0x55   : > { %v321_v10 = vsel %vm320_vm0, %v304_v5, -inf  ;;  %v322_v11 = vsel %vm320_vm0, %v305_v6, -inf  ;;  %v323_v12 = vsel %vm320_vm0, %v306_v7, -inf  ;;  %v324_v13 = vsel %vm320_vm0, %v307_v9, -inf  ;;  %v308_v16 = vld [vmem:[%s245_s6] sm:$0x3] }
  0x56   : > { %v317_v4 = vmul.u32 128, %v310_v2  ;;  %v325_v14 = vmax.f32 %v321_v10, %v322_v11  ;;  %v326_v15 = vmax.f32 %v323_v12, %v324_v13  ;;  %vm365_vm2 = vcmp.ne.s32.totalorder %v308_v16, 255  ;;  %s992_s15 = smov (!%p286_p7, %s747_s15), 1 }
  0x57   : > { %vm350_vm4 = vcmp.eq.s32.totalorder %v308_v16, 0  ;;  %vm351_vm5 = vcmp.eq.s32.totalorder %v308_v16, 1  ;;  %vm352_vm6 = vcmp.eq.s32.totalorder %v308_v16, 2  ;;  %vm353_vm7 = vcmp.eq.s32.totalorder %v308_v16, 3  ;;  %s291_s10 = scalar_lea.vmem %s973_s2, %s992_s15  ;;  %s297_s21 = scalar_lea.vmem %s974_s3, %s992_s15 }
  0x58   : > { %v318_v8 = vadd.s32 %v317_v4, %v312_v3  ;;  %v327_v17 = vmax.f32 %v325_v14, %v326_v15  ;;  %v354_v40 = vsel %vm350_vm4, %v304_v5, 0.0  ;;  %v355_v41 = vsel %vm351_vm5, %v305_v6, 0.0 }
  0x59   : > { %v358_v43 = vsel %vm320_vm0, %v354_v40, 0.0  ;;  %v359_v44 = vsel %vm320_vm0, %v355_v41, 0.0  ;;  %v356_v45 = vsel %vm352_vm6, %v306_v7, 0.0  ;;  %v357_v48 = vsel %vm353_vm7, %v307_v9, 0.0 }
  0x5a   : > { %vm319_vm1 = vcmp.lt.s32.totalorder %v318_v8, 256  ;;  %v372_v18 = vld [vmem:[#allocation3] sm:$0x3]  ;;  %v328_v19 = vsub.f32 %v304_v5, %v327_v17  ;;  %v329_v20 = vsub.f32 %v305_v6, %v327_v17  ;;  %v330_v21 = vsub.f32 %v306_v7, %v327_v17  ;;  %v369_v56 = vld [vmem:[#allocation2] sm:$0x3] }
  0x5b   : > { %v331_v22 = vsub.f32 %v307_v9, %v327_v17  ;;  %vm927_vm3 = vmand %vm365_vm2, %vm319_vm1  ;;  %v360_v46 = vadd.f32 %v359_v44, %v358_v43  ;;  %v361_v47 = vsel %vm320_vm0, %v356_v45, 0.0  ;;  %v363_v50 = vsel %vm320_vm0, %v357_v48, 0.0 }
  0x5c   : > { %v560_v24 = vsel %vm927_vm3, 1.0, %v761_v1  ;;  %v332_v25 = vmul.f32 1.442695, %v328_v19  ;;  %v334_v26 = vmul.f32 1.442695, %v329_v20  ;;  %vm392_vm8 = vcmask 0  }
  0x5d   : > { %v336_v27 = vmul.f32 1.442695, %v330_v21  ;;  %v375_v28 = vadd.f32 %v560_v24, %v372_v18  ;;  %v338_v29 = vmul.f32 1.442695, %v331_v22  ;;  %v362_v49 = vadd.f32 %v361_v47, %v360_v46 }
  0x5e   : > { %631 = vpow2.f32 %v332_v25 }
  0x5f   : > { %376 = vst [vmem:[#allocation3] sm:$0x3] %v375_v28  ;;  %633 = vpow2.f32 %v334_v26  ;;  %v364_v53 = vadd.f32 %v363_v50, %v362_v49 }
  0x60   : > { %635 = vpow2.f32 %v336_v27 }
  0x61   : > { %637 = vpow2.f32 %v338_v29 }
  0x66   : > { %v394_v60 = vld [vmem:[#allocation3] sm:$0x3] }
  0x67   : > { %v395_v62 = vsel %vm320_vm0, %v394_v60, 0.0 }
  0x68   : > { %v632_v30 = vpop.eup %631 }
  0x69   : > { %v634_v31 = vpop.eup %633  ;;  %v340_v32 = vsel %vm320_vm0, %v632_v30, 0.0 }
  0x6a   : > { %v636_v33 = vpop.eup %635  ;;  %v341_v34 = vsel %vm320_vm0, %v634_v31, 0.0 }
  0x6b   : > { %v638_v35 = vpop.eup %637  ;;  %v342_v36 = vadd.f32 %v341_v34, %v340_v32  ;;  %v343_v37 = vsel %vm320_vm0, %v636_v33, 0.0 }
  0x6c   : > { %v345_v38 = vsel %vm320_vm0, %v638_v35, 0.0 }
  0x6d   : > { %v344_v39 = vadd.f32 %v343_v37, %v342_v36 }
  0x6f   : > { %v346_v42 = vadd.f32 %v345_v38, %v344_v39 }
  0x71   : > { %639 = vlog2.f32 %v346_v42 }
  0x7b   : > { %v640_v51 = vpop.eup %639 }
  0x7c   : > { %v348_v52 = vmul.f32 0.6931472, %v640_v51 }
  0x7e   : > { %v349_v54 = vadd.f32 %v348_v52, %v327_v17 }
  0x80   : > { %v367_v55 = vsub.f32 %v349_v54, %v364_v53 }
  0x82   : > { %v368_v57 = vsel %vm927_vm3, %v367_v55, 0.0 }
  0x83   : > { %v370_v58 = vadd.f32 %v369_v56, %v368_v57 }
  0x85   : > { %371 = vst [vmem:[#allocation2] sm:$0x3] %v370_v58 }
  0x8c   : > { %v380_v59 = vld [vmem:[#allocation2] sm:$0x3] }
  0x8d   : > { %v381_v61 = vsel %vm320_vm0, %v380_v59, 0.0 }
  0x8e   : > { %382 = vadd.xlane.f32.xlu0 %v381_v61 }
  0x92   : > { %396 = vadd.xlane.f32.xlu0 %v395_v62 }
 0x11b   : > { %v383_v63 = vpop.xlane.xlu0 %382 }
 0x11c   : > { %v384_v0 = vrot.slane %v383_v63, 4 }
 0x11e   : > { %v385_v1 = vadd.f32 %v384_v0, %v383_v63 }
 0x11f   : > { %v397_v2 = vpop.xlane.xlu0 %396 }
 0x120   : > { %v386_v3 = vrot.slane %v385_v1, 2  ;;  %v398_v4 = vrot.slane %v397_v2, 4 }
 0x122   : > { %v399_v5 = vadd.f32 %v398_v4, %v397_v2  ;;  %v387_v6 = vadd.f32 %v386_v3, %v385_v1 }
 0x124   : > { %v400_v7 = vrot.slane %v399_v5, 2  ;;  %v388_v8 = vrot.slane %v387_v6, 1 }
 0x126   : > { %v401_v9 = vadd.f32 %v400_v7, %v399_v5  ;;  %v389_v10 = vadd.f32 %v388_v8, %v387_v6 }
 0x128   : > { %564 = vpush %v389_v10  ;;  %v402_v11 = vrot.slane %v401_v9, 1 }
 0x12a   : > { %v403_v12 = vadd.f32 %v402_v11, %v401_v9 }
 0x12c   : > { %566 = vpush %v403_v12 }
 0x159   : > { %s565_s18 = spop %564 }
 0x15a   : > { %v391_v13 = vstv %s565_s18 }
 0x15b   : > { %393 = vst.msk [vmem:[%s291_s10] sm:$0x1] %vm392_vm8, %v391_v13 }
 0x15d   : > { %s567_s22 = spop %566 }
 0x15e   : > { %v405_v14 = vstv %s567_s22 }
 0x15f   : > { %406 = vst.msk [vmem:[%s297_s21] sm:$0x1] %vm392_vm8, %v405_v14 }
 0x160 PF: > { %s20_s17 = sadd.s32 1, %s755_s17   ;;  %s984_s12 = smov %s739_s13 }
 0x161   : > { %p17_p9 = scmp.ge.s32.totalorder %s20_s17, 4   ;;  %s985_s13 = smov %s743_s14 }
 0x162   : > { %s986_s14 = smov %s831_s24  ;;  %s987_s15 = smov %s751_s16 }
 0x163   : > { %s988_s16 = smov %s990_s19  ;;  %19 = sbr.rel (!%p17_p9) target bundleno = 6 (0x6), region = 101 }
 0x16a   :  { %448 = vsyncpa [#allocation5], 1 }
 0x16b   :  { %450 = vsyncpa [#allocation5 + $0x1], 1 }
 0x16c   :  { %451 = vsyncpa [#allocation7], 1 }
 0x16d   :  { %453 = vsyncpa [#allocation7 + $0x1], 1 }

</bundles_post_ra>
